<compile_context>
chip_gen: v5e
topology: v5e:2x2
jax: 0.10.0
libtpu: 0.0.40
codegen_flags: <defaults>
</compile_context>

<pallas_src>
import functools

import jax
import jax.numpy as jnp
from jax.experimental import pallas as pl
from jax.experimental.pallas import tpu as pltpu


def _round_up(n: int, m: int) -> int:
    return ((n + m - 1) // m) * m


def _cdiv(a: int, b: int) -> int:
    return (a + b - 1) // b


@functools.lru_cache(maxsize=1)
def _vmem_limit_bytes() -> int:
    """Generation-aware VMEM cap: ~75% of physical VMEM (48 MiB on v7x,
    ~96 MiB on v5e/v6e).  Falls back to the smallest (v7x) capacity."""
    cap = 64 << 20  # conservative fallback = v7x per-core VMEM
    try:
        info = pltpu.get_tpu_info()
        c = int(getattr(info, "vmem_capacity_bytes", 0) or 0)
        if c > 0:
            cap = c
    except Exception:
        pass
    return (cap * 3) // 4


def _vmem_bytes_estimate(tb: int, d: int, h: int, w_itemsize: int) -> int:
    """Rough per-kernel VMEM footprint (lane-padded tiles, double buffers)."""
    dpad = _round_up(d, 128)
    hpad = _round_up(h, 128)
    # Resident weights/bias: conservatively assume Mosaic double-buffers them
    # even with a constant index_map (b1/w2 rows pad to (8, 128k) tiles).
    resident = 2 * (d * h * w_itemsize) + 2 * (2 * 8 * hpad * 4)
    # Streamed tiles, double-buffered: x (f32) in, (tb, 1)->(tb, 128) out.
    streamed = 2 * tb * dpad * 4 + 2 * tb * 128 * 4
    # In-kernel live values: bf16 copy of the x tile + the (tb, H) f32 fc1
    # intermediate (counted twice for its doubled live range around ReLU/fc2).
    live = tb * dpad * w_itemsize + 2 * tb * hpad * 4
    return resident + streamed + live


def _mlp_kernel(x_ref, w1_ref, b1_ref, w2_ref, b2_ref, o_ref):
    # In-kernel cast: x is read from HBM once as f32 and narrowed here (no-op
    # when w1 is f32), instead of a separate XLA cast pass in the wrapper.
    x = x_ref[...].astype(w1_ref.dtype)
    # fc1 on the MXU, f32 accumulation.
    h = jnp.dot(x, w1_ref[...], preferred_element_type=jnp.float32)
    # bias + ReLU in f32 on the VPU.
    h = jnp.maximum(h + b1_ref[...], 0.0)
    # fc2 (H -> 1) as VPU multiply + XLU cross-lane sum; avoids a 1-column MXU
    # matmul that would use <1% of the MXU.
    out = jnp.sum(h * w2_ref[...], axis=-1, keepdims=True)
    # TODO(synk): a lane-dense (1, tb) output tile would avoid tb/8 masked
    # vst.msk stores and a 4-byte-row writeback DMA, but requires a
    # (tb,1)->(1,tb) relayout in-kernel; since output bytes are <= x bytes / D
    # here, the column layout is kept for lowering robustness.
    o_ref[...] = (out + b2_ref[0]).astype(o_ref.dtype)


@functools.partial(jax.jit, static_argnames=("block_b", "use_bf16"))
def network_forward(x, w1, b1, w2, b2, *, block_b=1024, use_bf16=True):
    """Forward pass of Network.

    x  : (B, D)  float32
    w1 : (D, H)  float32  (fc1 weight, transposed vs torch's (H, D))
    b1 : (1, H)  float32
    w2 : (1, H)  float32  (fc2 weight, same layout as torch)
    b2 : (1,)    float32
    returns (B, 1) float32
    """
    B, D = x.shape
    H = w1.shape[1]
    assert w1.shape == (D, H) and b1.shape == (1, H)
    assert w2.shape == (1, H) and b2.shape == (1,)

    # Only the (small, resident) weight is cast in the wrapper; the streamed x
    # stays f32 and is cast inside the kernel.
    w1_in = w1.astype(jnp.bfloat16) if use_bf16 else w1
    w_itemsize = jnp.dtype(w1_in.dtype).itemsize

    # Batch tile: multiple of the f32 sublane packing (8).  Target >= 2 grid
    # steps whenever B allows so v7x's two TensorCores both get work, capped at
    # block_b, then shrunk until the VMEM budget (incl. the fc1 intermediate)
    # fits the generation-aware cap.
    row_mult = 8
    tb = max(row_mult, min(block_b, _round_up(_cdiv(B, 2), row_mult)))
    vmem_cap = _vmem_limit_bytes()
    while tb > row_mult and _vmem_bytes_estimate(tb, D, H, w_itemsize) > vmem_cap:
        tb = max(row_mult, _round_up(tb // 2, row_mult))
    # TODO(synk): if the resident weights alone exceed the budget (very large
    # D*H), add a K-reduction grid axis with a VMEM accumulator instead of
    # keeping w1 fully resident.
    # TODO(synk): for tiny D (e.g. 16) the (tb, D) x tile uses D/128 of each
    # vreg and 32-64 B DMA rows; a lane-dense flattened x slab (or padding D/H
    # to 128/256 multiples at init for MXU efficiency) would help if such
    # configs ever dominate.

    grid = (_cdiv(B, tb),)

    cost = pl.CostEstimate(
        flops=2 * B * D * H + 3 * B * H,
        transcendentals=0,
        bytes_accessed=B * D * 4 + D * H * w_itemsize + 2 * H * 4 + 4 + B * 4,
    )

    out = pl.pallas_call(
        _mlp_kernel,
        out_shape=jax.ShapeDtypeStruct((B, 1), jnp.float32),
        grid=grid,
        in_specs=[
            # x streamed per batch tile (partial last block is fine: rows are
            # independent and the masked writeback discards padded rows).
            pl.BlockSpec((tb, D), lambda i: (i, 0)),
            pl.BlockSpec((D, H), lambda i: (0, 0)),          # w1: resident
            pl.BlockSpec((1, H), lambda i: (0, 0)),          # b1: resident
            pl.BlockSpec((1, H), lambda i: (0, 0)),          # w2: resident
            pl.BlockSpec(memory_space=pltpu.MemorySpace.SMEM),  # b2: scalar
        ],
        out_specs=pl.BlockSpec((tb, 1), lambda i: (i, 0)),
        compiler_params=pltpu.CompilerParams(
            dimension_semantics=("parallel",),
            vmem_limit_bytes=int(vmem_cap),
        ),
        cost_estimate=cost,
    )(x, w1_in, b1, w2, b2)

    return out


def init_params(key, dim, hidden_size):
    """Deterministic init (roughly mirroring nn.Linear's uniform init)."""
    k1, k2, k3, k4 = jax.random.split(key, 4)
    bound1 = 1.0 / (dim ** 0.5)
    bound2 = 1.0 / (hidden_size ** 0.5)
    w1 = jax.random.uniform(k1, (dim, hidden_size), jnp.float32, -bound1, bound1)
    b1 = jax.random.uniform(k2, (1, hidden_size), jnp.float32, -bound1, bound1)
    w2 = jax.random.uniform(k3, (1, hidden_size), jnp.float32, -bound2, bound2)
    b2 = jax.random.uniform(k4, (1,), jnp.float32, -bound2, bound2)
    return w1, b1, w2, b2


if __name__ == "__main__":
    # Small shapes consistent with Network(dim, hidden_size).
    B, DIM, HIDDEN = 8, 16, 32

    key = jax.random.PRNGKey(0)
    kx, kp = jax.random.split(key)
    x = jax.random.normal(kx, (B, DIM), dtype=jnp.float32)
    w1, b1, w2, b2 = init_params(kp, DIM, HIDDEN)

    out = network_forward(x, w1, b1, w2, b2)
    out = jax.block_until_ready(out)
    assert out.shape == (B, 1)

    # Reference with the same bf16 rounding of the fc1 operands (tight check
    # of the kernel logic itself).
    x_bf = x.astype(jnp.bfloat16).astype(jnp.float32)
    w1_bf = w1.astype(jnp.bfloat16).astype(jnp.float32)
    ref_bf = jnp.maximum(x_bf @ w1_bf + b1, 0.0) @ w2.T + b2
    assert jnp.allclose(out, ref_bf, atol=1e-3, rtol=1e-3)

    # Full-f32 reference (loose tolerance: bf16 fc1 operands change results at
    # the ~1e-3 level).
    ref_f32 = jnp.maximum(x @ w1 + b1, 0.0) @ w2.T + b2
    assert jnp.allclose(out, ref_f32, atol=1e-1, rtol=1e-1)

    print("KERNEL_OK")
</pallas_src>

<mosaic_0001>
module attributes {stable_mosaic.version = 11 : i64} {
  func.func @_mlp_kernel(%arg0: i32, %arg1: memref<8x16xf32, #tpu.memory_space<vmem>>, %arg2: memref<16x32xbf16, #tpu.memory_space<vmem>>, %arg3: memref<1x32xf32, #tpu.memory_space<vmem>>, %arg4: memref<1x32xf32, #tpu.memory_space<vmem>>, %arg5: memref<1xf32, #tpu.memory_space<smem>>, %arg6: memref<8x1xf32, #tpu.memory_space<vmem>>) attributes {dimension_semantics = [#tpu.dimension_semantics<parallel>], iteration_bounds = array<i64: 1>, scalar_prefetch = 0 : i64, scratch_operands = 0 : i64, tpu.core_type = #tpu.core_type<tc>, window_params = [{transform_indices = @transform_0, window_bounds = array<i64: 8, 16>}, {pipeline_mode = #tpu.pipeline_mode<synchronous>, transform_indices = @transform_1, window_bounds = array<i64: 16, 32>}, {pipeline_mode = #tpu.pipeline_mode<synchronous>, transform_indices = @transform_2, window_bounds = array<i64: 1, 32>}, {pipeline_mode = #tpu.pipeline_mode<synchronous>, transform_indices = @transform_3, window_bounds = array<i64: 1, 32>}, {transform_indices = @transform_4, window_bounds = array<i64: 1>}, {transform_indices = @transform_5, window_bounds = array<i64: 8, 1>}]} {
    %c0 = arith.constant 0 : index
    %c0_0 = arith.constant 0 : index
    %0 = vector.load %arg1[%c0, %c0_0] : memref<8x16xf32, #tpu.memory_space<vmem>>, vector<8x16xf32>
    %1 = arith.truncf %0 : vector<8x16xf32> to vector<8x16xbf16>
    %c0_1 = arith.constant 0 : index
    %c0_2 = arith.constant 0 : index
    %2 = vector.load %arg2[%c0_1, %c0_2] : memref<16x32xbf16, #tpu.memory_space<vmem>>, vector<16x32xbf16>
    %cst = arith.constant dense<0.000000e+00> : vector<8x32xf32>
    %3 = tpu.matmul %1, %2, %cst {dimension_numbers = #tpu.dot_dimension_numbers<[1], [0], [0], [1], [0, 0, 1, 1], [], []>} : vector<8x16xbf16>, vector<16x32xbf16>, vector<8x32xf32> -> vector<8x32xf32>
    %c0_3 = arith.constant 0 : index
    %c0_4 = arith.constant 0 : index
    %4 = vector.load %arg3[%c0_3, %c0_4] : memref<1x32xf32, #tpu.memory_space<vmem>>, vector<1x32xf32>
    %5 = vector.broadcast %4 : vector<1x32xf32> to vector<8x32xf32>
    %6 = arith.addf %3, %5 : vector<8x32xf32>
    %cst_5 = arith.constant 0.000000e+00 : f32
    %7 = vector.broadcast %cst_5 : f32 to vector<8x32xf32>
    %8 = arith.maximumf %6, %7 : vector<8x32xf32>
    %c0_6 = arith.constant 0 : index
    %c0_7 = arith.constant 0 : index
    %9 = vector.load %arg4[%c0_6, %c0_7] : memref<1x32xf32, #tpu.memory_space<vmem>>, vector<1x32xf32>
    %10 = vector.broadcast %9 : vector<1x32xf32> to vector<8x32xf32>
    %11 = arith.mulf %8, %10 : vector<8x32xf32>
    %cst_8 = arith.constant dense<0.000000e+00> : vector<8xf32>
    %12 = vector.multi_reduction <add>, %11, %cst_8 [1] : vector<8x32xf32> to vector<8xf32>
    %13 = vector.shape_cast %12 : vector<8xf32> to vector<8x1xf32>
    %c0_9 = arith.constant 0 : index
    %14 = memref.load %arg5[%c0_9] : memref<1xf32, #tpu.memory_space<smem>>
    %15 = vector.broadcast %14 : f32 to vector<8x1xf32>
    %16 = arith.addf %13, %15 : vector<8x1xf32>
    %c0_10 = arith.constant 0 : index
    %c0_11 = arith.constant 0 : index
    %17 = vector.load %arg6[%c0_10, %c0_11] : memref<8x1xf32, #tpu.memory_space<vmem>>, vector<8x1xf32>
    tpu.vector_store %arg6[%c0_10, %c0_11], %16 {strides = array<i32>} : memref<8x1xf32, #tpu.memory_space<vmem>>, vector<8x1xf32>,
    return
  }
  func.func @transform_0(%arg0: i32) -> (i32, i32) {
    %c0_i32 = arith.constant 0 : i32
    %c0_i32_0 = arith.constant 0 : i32
    return %arg0, %c0_i32 : i32, i32
  }
  func.func @transform_1(%arg0: i32) -> (i32, i32) {
    %c0_i32 = arith.constant 0 : i32
    %c0_i32_0 = arith.constant 0 : i32
    %c0_i32_1 = arith.constant 0 : i32
    return %c0_i32, %c0_i32_0 : i32, i32
  }
  func.func @transform_2(%arg0: i32) -> (i32, i32) {
    %c0_i32 = arith.constant 0 : i32
    %c0_i32_0 = arith.constant 0 : i32
    %c0_i32_1 = arith.constant 0 : i32
    return %c0_i32, %c0_i32_0 : i32, i32
  }
  func.func @transform_3(%arg0: i32) -> (i32, i32) {
    %c0_i32 = arith.constant 0 : i32
    %c0_i32_0 = arith.constant 0 : i32
    %c0_i32_1 = arith.constant 0 : i32
    return %c0_i32, %c0_i32_0 : i32, i32
  }
  func.func @transform_4(%arg0: i32) -> i32 {
    %c0_i32 = arith.constant 0 : i32
    %c0_i32_0 = arith.constant 0 : i32
    return %c0_i32 : i32
  }
  func.func @transform_5(%arg0: i32) -> (i32, i32) {
    %c0_i32 = arith.constant 0 : i32
    %c0_i32_0 = arith.constant 0 : i32
    return %arg0, %c0_i32 : i32, i32
  }
}

</mosaic_0001>

<bundles_post_ra>
// kernel: network_forward.1
= control target key start
LH: loop header
LB: loop body
LE: loop exit
PB: predicated region body
PF: predicated region fallthrough
CT: control target
= control target key end

     0   :  { %vm36_vm0 = vcmask 130048   ;;  %vm59_vm1 = vcmask 261120   ;;  %vm66_vm2 = vcmask 7168   ;;  %s128_s1 = inlined_call_operand.vmem [shape: bf16[16,32], index: 1, kind: input, shape index: {}]   ;;  %s129_s0 = inlined_call_operand.vmem [shape: f32[8,16], index: 0, kind: input, shape index: {}]   ;;  %s130_s2 = inlined_call_operand.vmem [shape: f32[1,32], index: 2, kind: input, shape index: {}]   ;;  %s131_s3 = inlined_call_operand.vmem [shape: f32[1,32], index: 3, kind: input, shape index: {}]   ;;  %s132_s4 = inlined_call_operand.<no memory space> [shape: f32[1], index: 4, kind: input, shape index: {}]   ;;  %s133_s5 = inlined_call_operand.vmem [shape: f32[8,1], index: 5, kind: output, shape index: {}]  }
   0x1   :  { %v77_v0 = vld [vmem:[%s128_s1] sm:$0xff]  ;;  %v64_v11 = vstv %s132_s4 }
   0x2   :  { %v22_v1 = vld [vmem:[%s129_s0] sm:$0xff]  ;;  %47 = vmatpush.bf16.msra.mxu0 %v77_v0 }
   0x3   :  { %v23_v2 = vpack.c.bf16 %v22_v1, %v22_v1  ;;  %v78_v3 = vld [vmem:[%s130_s2] ss:$0 sm:$0xff] }
   0x4   :  { %v79_v6 = vld [vmem:[%s131_s3] ss:$0 sm:$0xff] }
   0x5   :  { %76 = vmatmul.msk.bf16.vlgmr.msra.gmra.mxu0 %vm36_vm0, %v23_v2 }
  0x82   :  { %v49_v4 = vpop.f32.mrf.mxu0 }
  0x83   :  { %v50_v5 = vadd.f32 %v78_v3, %v49_v4 }
  0x85   :  { %v53_v7 = vmax.f32 %v50_v5, 0.0 }
  0x87   :  { %v58_v8 = vmul.f32 %v79_v6, %v53_v7 }
  0x89   :  { %v60_v9 = vsel %vm59_vm1, %v58_v8, 0.0 }
  0x8a   :  { %v51_v10 = vpop.f32.mrf.mxu0  ;;  %61 = vadd.xlane.f32.xlu0 %v60_v9 }
  0xfd   :  { %v62_v12 = vpop.xlane.xlu0 %61 }
  0xfe   :  { %v65_v13 = vadd.f32 %v64_v11, %v62_v12 }
 0x100   :  { %67 = vst.msk [vmem:[%s133_s5] sm:$0xff] %vm66_vm2, %v65_v13 }

</bundles_post_ra>
